<compile_context>
chip_gen: v7x
topology: tpu7x:2x2x1
jax: 0.10.0
libtpu: 0.0.40
codegen_flags: <defaults>
</compile_context>

<pallas_src>
import jax
import jax.numpy as jnp
from jax.experimental import pallas as pl
from jax.experimental.pallas import tpu as pltpu


def _moving_avg_kernel(mt_ref, x_ref, out_ref):
    """mt: (L_out, L) averaging matrix; x: (TB, L, C); out: (TB, L_out, C)."""
    mt = mt_ref[...]                                   # resident across the grid
    tb = x_ref.shape[0]                                # static batch-tile size
    for b in range(tb):                                # unrolled, tb <= 32
        out_ref[b] = jnp.dot(
            mt, x_ref[b], preferred_element_type=jnp.float32
        ).astype(out_ref.dtype)


def _avg_matrix_t(seq_len: int, kernel_size: int, stride: int):
    """M_T (L_out, L) s.t. (M_T @ x_b) == AvgPool1d(replicate_pad(x_b), K, S)."""
    pad = (kernel_size - 1) // 2
    l_out = (seq_len + 2 * pad - kernel_size) // stride + 1
    t = jnp.arange(l_out)[:, None]                     # (L_out, 1)
    k = jnp.arange(kernel_size)[None, :]               # (1, K)
    # padded index t*S + k maps to source index clip(t*S + k - pad, 0, L-1)
    src = jnp.clip(t * stride + k - pad, 0, seq_len - 1)          # (L_out, K)
    rows = jnp.broadcast_to(t, (l_out, kernel_size))
    mt = jnp.zeros((l_out, seq_len), jnp.float32).at[rows, src].add(
        1.0 / kernel_size)
    return mt, l_out


def _pick_batch_tile(batch: int, seq_len: int, l_out: int, channels: int,
                     itemsize: int, budget_bytes: int = 24 * 1024 * 1024) -> int:
    """Largest batch tile (<=32) whose double-buffered blocks fit the budget
    and which divides the batch exactly (no ragged tiles)."""
    per_row = (seq_len * channels + l_out * channels) * itemsize  # x + out blocks
    m_bytes = l_out * seq_len * 4                                 # resident M_T
    avail = max(budget_bytes - 2 * m_bytes, 4 * per_row)
    tb = max(1, avail // (4 * per_row))                           # 2x double-buffer
    tb = int(min(tb, batch, 32))
    while batch % tb:
        tb -= 1
    return tb


def moving_avg_forward(x, kernel_size: int, stride: int):
    """x: (B, L, C) -> (B, L_out, C). Matches the PyTorch moving_avg module."""
    B, L, C = x.shape
    mt, L_out = _avg_matrix_t(L, kernel_size, stride)
    mt = mt.astype(x.dtype)                            # bf16-in -> bf16 operands
    tb = _pick_batch_tile(B, L, L_out, C, jnp.dtype(x.dtype).itemsize)
    grid = (B // tb,)

    return pl.pallas_call(
        _moving_avg_kernel,
        out_shape=jax.ShapeDtypeStruct((B, L_out, C), x.dtype),
        grid_spec=pltpu.PrefetchScalarGridSpec(
            num_scalar_prefetch=0,
            grid=grid,
            in_specs=[
                pl.BlockSpec((L_out, L), lambda i: (0, 0)),      # M_T, resident
                pl.BlockSpec((tb, L, C), lambda i: (i, 0, 0)),   # x batch tile
            ],
            out_specs=pl.BlockSpec((tb, L_out, C), lambda i: (i, 0, 0)),
        ),
        compiler_params=pltpu.CompilerParams(
            dimension_semantics=("parallel",),
            vmem_limit_bytes=32 * 1024 * 1024,
        ),
    )(mt, x)


def moving_avg_reference(x, kernel_size: int, stride: int):
    """Plain-JAX replica of the PyTorch forward (for validation)."""
    pad = (kernel_size - 1) // 2
    front = jnp.repeat(x[:, :1, :], pad, axis=1)
    end = jnp.repeat(x[:, -1:, :], pad, axis=1)
    xp = jnp.concatenate([front, x, end], axis=1)                 # (B, L+2p, C)
    l_out = (xp.shape[1] - kernel_size) // stride + 1
    return jnp.stack(
        [xp[:, t * stride:t * stride + kernel_size, :].mean(axis=1)
         for t in range(l_out)],
        axis=1)


if __name__ == "__main__":
    B, L, C = 2, 16, 4            # batch, time (lag_size), channels
    K, S = 25, 1                  # DLinear uses kernel_size=25, stride=1

    key = jax.random.PRNGKey(0)
    x = jax.random.normal(key, (B, L, C), dtype=jnp.float32)

    fwd = jax.jit(moving_avg_forward, static_argnums=(1, 2))
    out = jax.block_until_ready(fwd(x, K, S))
    ref = jax.block_until_ready(moving_avg_reference(x, K, S))

    assert out.shape == ref.shape, (out.shape, ref.shape)
    assert jnp.allclose(out, ref, atol=1e-5, rtol=1e-5), (out, ref)
    print("KERNEL_OK")
</pallas_src>

<mosaic_0001>
module attributes {stable_mosaic.version = 11 : i64} {
  func.func private @main(%arg0: i32) attributes {dimension_semantics = [#tpu.dimension_semantics<core_parallel>], iteration_bounds = array<i64: 2>, tpu.core_type = #tpu.core_type<sc_scalar_subcore>, window_params = []} {
    return
  }
}

module attributes {stable_mosaic.version = 11 : i64} {
  func.func private @main(%arg0: i32) attributes {dimension_semantics = [#tpu.dimension_semantics<core_parallel>], iteration_bounds = array<i64: 2>, tpu.core_type = #tpu.core_type<sc_scalar_subcore>, window_params = []} {
    return
  }
}

module attributes {stable_mosaic.version = 11 : i64} {
  func.func @_moving_avg_kernel(%arg0: i32, %arg1: memref<16x16xf32, #tpu.memory_space<vmem>>, %arg2: memref<2x16x4xf32, #tpu.memory_space<vmem>>, %arg3: memref<2x16x4xf32, #tpu.memory_space<vmem>>) attributes {dimension_semantics = [#tpu.dimension_semantics<parallel>], iteration_bounds = array<i64: 1>, scalar_prefetch = 0 : i64, scratch_operands = 0 : i64, tpu.core_type = #tpu.core_type<tc>, window_params = [{pipeline_mode = #tpu.pipeline_mode<synchronous>, transform_indices = @transform_0, window_bounds = array<i64: 16, 16>}, {transform_indices = @transform_1, window_bounds = array<i64: 2, 16, 4>}, {transform_indices = @transform_2, window_bounds = array<i64: 2, 16, 4>}]} {
    %c0 = arith.constant 0 : index
    %c0_0 = arith.constant 0 : index
    %0 = vector.load %arg1[%c0, %c0_0] : memref<16x16xf32, #tpu.memory_space<vmem>>, vector<16x16xf32>
    %c0_1 = arith.constant 0 : index
    %c0_2 = arith.constant 0 : index
    %c0_3 = arith.constant 0 : index
    %1 = vector.load %arg2[%c0_1, %c0_2, %c0_3] : memref<2x16x4xf32, #tpu.memory_space<vmem>>, vector<1x16x4xf32>
    %2 = vector.shape_cast %1 : vector<1x16x4xf32> to vector<16x4xf32>
    %cst = arith.constant dense<0.000000e+00> : vector<16x4xf32>
    %3 = tpu.matmul %0, %2, %cst {dimension_numbers = #tpu.dot_dimension_numbers<[1], [0], [0], [1], [0, 0, 1, 1], [], []>} : vector<16x16xf32>, vector<16x4xf32>, vector<16x4xf32> -> vector<16x4xf32>
    %c0_4 = arith.constant 0 : index
    %c0_5 = arith.constant 0 : index
    %c0_6 = arith.constant 0 : index
    %4 = vector.load %arg3[%c0_4, %c0_5, %c0_6] : memref<2x16x4xf32, #tpu.memory_space<vmem>>, vector<1x16x4xf32>
    %5 = vector.shape_cast %4 : vector<1x16x4xf32> to vector<16x4xf32>
    %6 = vector.shape_cast %3 : vector<16x4xf32> to vector<1x16x4xf32>
    tpu.vector_store %arg3[%c0_4, %c0_5, %c0_6], %6 {strides = array<i32>} : memref<2x16x4xf32, #tpu.memory_space<vmem>>, vector<1x16x4xf32>,
    %c1 = arith.constant 1 : index
    %c0_7 = arith.constant 0 : index
    %c0_8 = arith.constant 0 : index
    %7 = vector.load %arg2[%c1, %c0_7, %c0_8] : memref<2x16x4xf32, #tpu.memory_space<vmem>>, vector<1x16x4xf32>
    %8 = vector.shape_cast %7 : vector<1x16x4xf32> to vector<16x4xf32>
    %cst_9 = arith.constant dense<0.000000e+00> : vector<16x4xf32>
    %9 = tpu.matmul %0, %8, %cst_9 {dimension_numbers = #tpu.dot_dimension_numbers<[1], [0], [0], [1], [0, 0, 1, 1], [], []>} : vector<16x16xf32>, vector<16x4xf32>, vector<16x4xf32> -> vector<16x4xf32>
    %c1_10 = arith.constant 1 : index
    %c0_11 = arith.constant 0 : index
    %c0_12 = arith.constant 0 : index
    %10 = vector.load %arg3[%c1_10, %c0_11, %c0_12] : memref<2x16x4xf32, #tpu.memory_space<vmem>>, vector<1x16x4xf32>
    %11 = vector.shape_cast %10 : vector<1x16x4xf32> to vector<16x4xf32>
    %12 = vector.shape_cast %9 : vector<16x4xf32> to vector<1x16x4xf32>
    tpu.vector_store %arg3[%c1_10, %c0_11, %c0_12], %12 {strides = array<i32>} : memref<2x16x4xf32, #tpu.memory_space<vmem>>, vector<1x16x4xf32>,
    return
  }
  func.func @transform_0(%arg0: i32) -> (i32, i32) {
    %c0_i32 = arith.constant 0 : i32
    %c0_i32_0 = arith.constant 0 : i32
    %c0_i32_1 = arith.constant 0 : i32
    return %c0_i32, %c0_i32_0 : i32, i32
  }
  func.func @transform_1(%arg0: i32) -> (i32, i32, i32) {
    %c0_i32 = arith.constant 0 : i32
    %c0_i32_0 = arith.constant 0 : i32
    %c0_i32_1 = arith.constant 0 : i32
    return %arg0, %c0_i32, %c0_i32_0 : i32, i32, i32
  }
  func.func @transform_2(%arg0: i32) -> (i32, i32, i32) {
    %c0_i32 = arith.constant 0 : i32
    %c0_i32_0 = arith.constant 0 : i32
    %c0_i32_1 = arith.constant 0 : i32
    return %arg0, %c0_i32, %c0_i32_0 : i32, i32, i32
  }
}

</mosaic_0001>

<bundles_post_ra>
// kernel: moving_avg_forward.1
= control target key start
LH: loop header
LB: loop body
LE: loop exit
PB: predicated region body
PF: predicated region fallthrough
CT: control target
= control target key end

     0   :  { %7 = vsyncpa [#allocation3], 0  ;;  %s265_s9 = smov [#allocation2]   ;;  %s323_s0 = inlined_call_operand.hbm [shape: f32[16,16], index: 0, kind: input, shape index: {}]   ;;  %s324_s1 = inlined_call_operand.vmem [shape: f32[2,16,4], index: 1, kind: input, shape index: {}]   ;;  %s325_s2 = inlined_call_operand.vmem [shape: f32[2,16,4], index: 2, kind: output, shape index: {}]  }
   0x1   :  { %s13_s10 = sshll.u32 %s265_s9, 4  ;;  %s241_s13 = scalar_lea.hbm %s323_s0, 256  ;;  %s14_s10 = int_to_ptr.vmem [resolvable:$true] %s13_s10 }
   0x2   :  { %p242_p0 = scmp.ne.s32.totalorder %s323_s0, %s241_s13  ;;  %p245_p1 = scmp.lt.u32.totalorder %s241_s13, %s323_s0 }
   0x4   :  { %p247_p2 = pnand %p245_p1, %p242_p0 }
   0x6   :  { %250 = shalt.err (!%p247_p2)
}
   0x7   :  { %s251_s18 = scalar_lea.vmem %s14_s10, 256  ;;  %p256_p4 = scmp.lt.s32.totalorder %s14_s10, %s14_s10 }
   0x8   :  { %p252_p3 = scmp.ne.s32.totalorder %s14_s10, %s251_s18  ;;  %p257_p5 = scmp.lt.s32.totalorder %s251_s18, %s251_s18 }
   0xa   :  { %p258_p6 = por %p257_p5, %p256_p4 }
   0xc   :  { %p259_p7 = pnand %p258_p6, %p252_p3 }
   0xe   :  { %262 = shalt.err (!%p259_p7)
}
   0xf   :  { %s266_s19 = smov 128   ;;  %s267_s20 = smov 8  }
  0x10   :  { %19 = dma.hbm_to_vmem [thread:$0]  %s323_s0, 256, %s14_s10, [#allocation3], %s266_s19, %s266_s19, %s267_s20  }
  0x11   :  { %263 = dma.done.wait [#allocation3], 256  }
  0x12   :  { %264 = vsyncadd [#allocation3], 4294967040  ;;  %vm29_vm0 = vcmask 130048   ;;  %v27_v0 = vld [vmem:[%s324_s1] sm:$0xff]  ;;  %v28_v1 = vld [vmem:[%s324_s1 + $0x8] sm:$0xff]  ;;  %vm111_vm1 = vcmask 31744  }
  0x13   :  { %v202_v2 = vld [vmem:[%s324_s1 + $0x10] sm:$0xff]  ;;  %v230_v3 = vpack.c.bf16 %v28_v1, %v27_v0  ;;  %v203_v4 = vld [vmem:[%s324_s1 + $0x18] sm:$0xff]  ;;  %v25_v5 = vld [vmem:[#allocation2] sm:$0xff] }
  0x14   :  { %v234_v6 = vpack.c.bf16 %v203_v4, %v202_v2  ;;  %220 = vmatprep.mubr.msk.f32.mxu0 %vm29_vm0, %v25_v5  ;;  %227 = vmatprep.mubr.msk.f32.mxu1 %vm29_vm0, %v25_v5  ;;  %v26_v7 = vld [vmem:[#allocation2 + $0x8] sm:$0xff] }
  0x15   :  { %231 = vmatprep.subr.bf16.mxu0 %v230_v3 }
  0x16   :  { %235 = vmatprep.subr.bf16.mxu1 %v234_v6  ;;  %233 = vmatpush3.bf16.msra.mxu0 %v230_v3 }
  0x17   :  { %237 = vmatpush3.bf16.msra.mxu1 %v234_v6 }
  0x19   :  { %221 = vmatmul.mubr.msk.f32.vlgmr.msra.gmra.mrb[0].mxu0 %vm29_vm0, %v26_v7 }
  0x1a   :  { %228 = vmatmul.mubr.msk.f32.vlgmr.msra.gmra.mrb[0].mxu1 %vm29_vm0, %v26_v7 }
  0xec   :  { %v222_v8 = vpop.f32.mrb[0].mxu0 }
  0xed   :  { %113 = vst.msk [vmem:[%s325_s2 + $0x8] sm:$0xff] %vm111_vm1, %v222_v8  ;;  %v229_v9 = vpop.f32.mrb[0].mxu1  ;;  %v102_v10 = vpop.f32.mrb[1].mxu0 }
  0xee   :  { %207 = vst.msk [vmem:[%s325_s2 + $0x18] sm:$0xff] %vm111_vm1, %v229_v9  ;;  %112 = vst.msk [vmem:[%s325_s2] sm:$0xff] %vm111_vm1, %v102_v10  ;;  %v183_v11 = vpop.f32.mrb[1].mxu1 }
  0xef   :  { %206 = vst.msk [vmem:[%s325_s2 + $0x10] sm:$0xff] %vm111_vm1, %v183_v11 }
  0xf0   :  { %199 = vsyncpa [#allocation3], 1 }

</bundles_post_ra>
